<compile_context>
chip_gen: v7x
topology: tpu7x:2x2x1
jax: 0.10.0
libtpu: 0.0.40
codegen_flags: <defaults>
</compile_context>

<pallas_src>
import functools
import math

import jax
import jax.numpy as jnp
from jax import lax
from jax.experimental import pallas as pl
from jax.experimental.pallas import tpu as pltpu

_SQRT_HALF = 1.0 / math.sqrt(2.0)


def _round_up(x, m):
    return (x + m - 1) // m * m


def _exact_gelu(x):
    # torch.nn.functional.gelu default (approximate='none'): 0.5*x*(1+erf(x/sqrt(2)))
    return 0.5 * x * (1.0 + lax.erf(x * _SQRT_HALF))


def mgm_head_kernel(x_ref, w1_ref, b1_ref, gamma_ref, beta_ref, w2_ref, bias_ref,
                    out_ref, h_ref, *, eps):
    # Transform depends only on the M-tile: run it once per row-tile (first vocab
    # step) and cache the result in VMEM scratch as bf16 (MXU-ready).
    @pl.when(pl.program_id(1) == 0)
    def _compute_transform():
        h = jnp.dot(x_ref[...], w1_ref[...],
                    preferred_element_type=jnp.float32)               # (TM, H) f32
        h = h + b1_ref[...].astype(jnp.float32)
        h = _exact_gelu(h)
        mean = jnp.mean(h, axis=-1, keepdims=True)
        centered = h - mean
        var = jnp.mean(centered * centered, axis=-1, keepdims=True)   # biased, like torch
        inv = lax.rsqrt(var + eps)
        h = centered * inv * gamma_ref[...].astype(jnp.float32) \
            + beta_ref[...].astype(jnp.float32)
        h_ref[...] = h.astype(h_ref.dtype)                            # cache bf16

    # Inner loop: decoder matmul for this (row-tile, vocab-tile) — pure MXU work.
    logits = jnp.dot(h_ref[...], w2_ref[...],
                     preferred_element_type=jnp.float32)              # (TM, TV) f32
    logits = logits + bias_ref[...].astype(jnp.float32)
    out_ref[...] = logits.astype(out_ref.dtype)


def mgm_head_forward(x, params, *, eps=1e-12, out_dtype=jnp.float32,
                     tm=256, tv=512):
    """x: (B, S, H) -> logits (B, S, V)."""
    B, S, H = x.shape
    V = params["w2"].shape[1]
    M = B * S

    # Tile sizes: shrink to the (padded) problem when it is smaller than the target.
    TM = min(tm, _round_up(M, 8))
    TV = min(tv, _round_up(V, 128))
    Mp = _round_up(M, TM)
    Vp = _round_up(V, TV)

    # bf16 MXU inputs (f32 accumulate inside the kernel); also halves HBM traffic.
    x2d = x.reshape(M, H).astype(jnp.bfloat16)
    w1 = params["w1"].astype(jnp.bfloat16)
    w2 = params["w2"].astype(jnp.bfloat16)
    b1, gamma, beta, bias = (params["b1"], params["gamma"],
                             params["beta"], params["bias"])

    if Mp != M:
        x2d = jnp.pad(x2d, ((0, Mp - M), (0, 0)))
    if Vp != V:
        w2 = jnp.pad(w2, ((0, 0), (0, Vp - V)))
        bias = jnp.pad(bias, ((0, 0), (0, Vp - V)))

    grid = (Mp // TM, Vp // TV)

    out_bytes = Mp * Vp * jnp.dtype(out_dtype).itemsize
    cost = pl.CostEstimate(
        flops=2 * M * H * (H + V),
        transcendentals=M * H,
        bytes_accessed=(x2d.size * 2 + w1.size * 2
                        + grid[0] * w2.size * 2              # w2 re-streamed per M-tile
                        + out_bytes + 4 * (3 * H + Vp)),
    )

    out2d = pl.pallas_call(
        functools.partial(mgm_head_kernel, eps=eps),
        out_shape=jax.ShapeDtypeStruct((Mp, Vp), out_dtype),
        grid_spec=pltpu.PrefetchScalarGridSpec(
            num_scalar_prefetch=0,
            grid=grid,
            in_specs=[
                pl.BlockSpec((TM, H), lambda i, j: (i, 0)),   # x rows
                pl.BlockSpec((H, H), lambda i, j: (0, 0)),    # w1 (resident)
                pl.BlockSpec((1, H), lambda i, j: (0, 0)),    # b1
                pl.BlockSpec((1, H), lambda i, j: (0, 0)),    # gamma
                pl.BlockSpec((1, H), lambda i, j: (0, 0)),    # beta
                pl.BlockSpec((H, TV), lambda i, j: (0, j)),   # w2 vocab tile
                pl.BlockSpec((1, TV), lambda i, j: (0, j)),   # bias vocab tile
            ],
            out_specs=pl.BlockSpec((TM, TV), lambda i, j: (i, j)),
            scratch_shapes=[pltpu.VMEM((TM, H), jnp.bfloat16)],  # cached transform h
        ),
        compiler_params=pltpu.CompilerParams(
            dimension_semantics=("parallel", "arbitrary")),
        cost_estimate=cost,
    )(x2d, w1, b1, gamma, beta, w2, bias)

    return out2d[:M, :V].reshape(B, S, V)


def init_params(key, hidden_size, vocab_size):
    """Deterministic synthetic parameters (shapes match the PyTorch module)."""
    k1, k2, k3 = jax.random.split(key, 3)
    bound1 = 1.0 / math.sqrt(hidden_size)
    # nn.Linear(H, H): weight (H, H); stored transposed -> (H_in, H_out)
    w1 = jax.random.uniform(k1, (hidden_size, hidden_size), jnp.float32,
                            -bound1, bound1)
    b1 = jax.random.uniform(k2, (1, hidden_size), jnp.float32, -bound1, bound1)
    # LayerNorm affine params
    gamma = jnp.ones((1, hidden_size), jnp.float32)
    beta = jnp.zeros((1, hidden_size), jnp.float32)
    # nn.Linear(H, V, bias=False): weight (V, H); stored transposed -> (H, V)
    w2 = jax.random.uniform(k3, (hidden_size, vocab_size), jnp.float32,
                            -bound1, bound1)
    # self.bias = zeros(V)  (as in __init__)
    bias = jnp.zeros((1, vocab_size), jnp.float32)
    return {"w1": w1, "b1": b1, "gamma": gamma, "beta": beta,
            "w2": w2, "bias": bias}


def _reference_forward(x, params, eps=1e-12):
    # Matches the kernel's numerics: bf16 MXU inputs, f32 accumulation & norms.
    xb = x.astype(jnp.bfloat16)
    w1 = params["w1"].astype(jnp.bfloat16)
    w2 = params["w2"].astype(jnp.bfloat16)
    h = jnp.dot(xb, w1, preferred_element_type=jnp.float32) + params["b1"]
    h = 0.5 * h * (1.0 + lax.erf(h * _SQRT_HALF))
    mean = jnp.mean(h, axis=-1, keepdims=True)
    var = jnp.mean((h - mean) ** 2, axis=-1, keepdims=True)
    h = (h - mean) * lax.rsqrt(var + eps) * params["gamma"] + params["beta"]
    logits = jnp.dot(h.astype(jnp.bfloat16), w2, preferred_element_type=jnp.float32)
    return logits + params["bias"]


# TODO(synk): loss_fn (masked cross-entropy) and anneal_weights are training-side
# utilities, not part of the forward pass; not implemented as kernels.

if __name__ == "__main__":
    key = jax.random.PRNGKey(0)

    # Case 1: small, nicely shaped.
    B, S, H, V = 2, 8, 32, 64
    k_x, k_p, k_x2, k_p2 = jax.random.split(key, 4)
    x = jax.random.normal(k_x, (B, S, H), jnp.float32)
    params = init_params(k_p, H, V)
    logits = jax.block_until_ready(mgm_head_forward(x, params, eps=1e-12))
    ref = _reference_forward(x, params)
    assert logits.shape == (B, S, V)
    assert jnp.allclose(logits, ref, atol=5e-3, rtol=5e-3), "case1 mismatch vs reference"

    # Case 2: ragged M / V to exercise the pad + slice path.
    B2, S2, H2, V2 = 1, 5, 32, 50
    x2 = jax.random.normal(k_x2, (B2, S2, H2), jnp.float32)
    params2 = init_params(k_p2, H2, V2)
    logits2 = jax.block_until_ready(mgm_head_forward(x2, params2, eps=1e-12))
    ref2 = _reference_forward(x2, params2)
    assert logits2.shape == (B2, S2, V2)
    assert jnp.allclose(logits2, ref2, atol=5e-3, rtol=5e-3), "case2 mismatch vs reference"

    print("KERNEL_OK")
</pallas_src>

<mosaic_0001>
module attributes {stable_mosaic.version = 11 : i64} {
  func.func @mgm_head_kernel(%arg0: i32, %arg1: i32, %arg2: memref<16x32xbf16, #tpu.memory_space<vmem>>, %arg3: memref<32x32xbf16, #tpu.memory_space<vmem>>, %arg4: memref<1x32xf32, #tpu.memory_space<vmem>>, %arg5: memref<1x32xf32, #tpu.memory_space<vmem>>, %arg6: memref<1x32xf32, #tpu.memory_space<vmem>>, %arg7: memref<32x128xbf16, #tpu.memory_space<vmem>>, %arg8: memref<1x128xf32, #tpu.memory_space<vmem>>, %arg9: memref<16x128xf32, #tpu.memory_space<vmem>>, %arg10: memref<16x32xbf16, #tpu.memory_space<vmem>>) attributes {dimension_semantics = [#tpu.dimension_semantics<parallel>, #tpu.dimension_semantics<arbitrary>], iteration_bounds = array<i64: 1, 1>, scalar_prefetch = 0 : i64, scratch_operands = 1 : i64, tpu.core_type = #tpu.core_type<tc>, window_params = [{transform_indices = @transform_0, window_bounds = array<i64: 16, 32>}, {pipeline_mode = #tpu.pipeline_mode<synchronous>, transform_indices = @transform_1, window_bounds = array<i64: 32, 32>}, {pipeline_mode = #tpu.pipeline_mode<synchronous>, transform_indices = @transform_2, window_bounds = array<i64: 1, 32>}, {pipeline_mode = #tpu.pipeline_mode<synchronous>, transform_indices = @transform_3, window_bounds = array<i64: 1, 32>}, {pipeline_mode = #tpu.pipeline_mode<synchronous>, transform_indices = @transform_4, window_bounds = array<i64: 1, 32>}, {transform_indices = @transform_5, window_bounds = array<i64: 32, 128>}, {transform_indices = @transform_6, window_bounds = array<i64: 1, 128>}, {transform_indices = @transform_7, window_bounds = array<i64: 16, 128>}]} {
    %c0_i32 = arith.constant 0 : i32
    %0 = arith.cmpi eq, %arg1, %c0_i32 : i32
    %1 = arith.extui %0 : i1 to i32
    %c0_i32_0 = arith.constant 0 : i32
    %2 = arith.cmpi ne, %1, %c0_i32_0 : i32
    scf.if %2 {
      %c0_8 = arith.constant 0 : index
      %c0_9 = arith.constant 0 : index
      %10 = vector.load %arg2[%c0_8, %c0_9] : memref<16x32xbf16, #tpu.memory_space<vmem>>, vector<16x32xbf16>
      %c0_10 = arith.constant 0 : index
      %c0_11 = arith.constant 0 : index
      %11 = vector.load %arg3[%c0_10, %c0_11] : memref<32x32xbf16, #tpu.memory_space<vmem>>, vector<32x32xbf16>
      %cst_12 = arith.constant dense<0.000000e+00> : vector<16x32xf32>
      %12 = tpu.matmul %10, %11, %cst_12 {dimension_numbers = #tpu.dot_dimension_numbers<[1], [0], [0], [1], [0, 0, 1, 1], [], []>} : vector<16x32xbf16>, vector<32x32xbf16>, vector<16x32xf32> -> vector<16x32xf32>
      %c0_13 = arith.constant 0 : index
      %c0_14 = arith.constant 0 : index
      %13 = vector.load %arg4[%c0_13, %c0_14] : memref<1x32xf32, #tpu.memory_space<vmem>>, vector<1x32xf32>
      %14 = vector.broadcast %13 : vector<1x32xf32> to vector<16x32xf32>
      %15 = arith.addf %12, %14 : vector<16x32xf32>
      %cst_15 = arith.constant 5.000000e-01 : f32
      %16 = vector.broadcast %cst_15 : f32 to vector<16x32xf32>
      %17 = arith.mulf %16, %15 : vector<16x32xf32>
      %cst_16 = arith.constant 0.707106769 : f32
      %18 = vector.broadcast %cst_16 : f32 to vector<16x32xf32>
      %19 = arith.mulf %15, %18 : vector<16x32xf32>
      %20 = math.erf %19 : vector<16x32xf32>
      %cst_17 = arith.constant 1.000000e+00 : f32
      %21 = vector.broadcast %cst_17 : f32 to vector<16x32xf32>
      %22 = arith.addf %21, %20 : vector<16x32xf32>
      %23 = arith.mulf %17, %22 : vector<16x32xf32>
      %cst_18 = arith.constant dense<0.000000e+00> : vector<16xf32>
      %24 = vector.multi_reduction <add>, %23, %cst_18 [1] : vector<16x32xf32> to vector<16xf32>
      %25 = vector.shape_cast %24 : vector<16xf32> to vector<16x1xf32>
      %cst_19 = arith.constant 3.200000e+01 : f32
      %26 = vector.broadcast %cst_19 : f32 to vector<16x1xf32>
      %27 = arith.divf %25, %26 : vector<16x1xf32>
      %28 = vector.broadcast %27 : vector<16x1xf32> to vector<16x32xf32>
      %29 = arith.subf %23, %28 : vector<16x32xf32>
      %30 = arith.mulf %29, %29 : vector<16x32xf32>
      %cst_20 = arith.constant dense<0.000000e+00> : vector<16xf32>
      %31 = vector.multi_reduction <add>, %30, %cst_20 [1] : vector<16x32xf32> to vector<16xf32>
      %32 = vector.shape_cast %31 : vector<16xf32> to vector<16x1xf32>
      %cst_21 = arith.constant 3.200000e+01 : f32
      %33 = vector.broadcast %cst_21 : f32 to vector<16x1xf32>
      %34 = arith.divf %32, %33 : vector<16x1xf32>
      %cst_22 = arith.constant 9.99999996E-13 : f32
      %35 = vector.broadcast %cst_22 : f32 to vector<16x1xf32>
      %36 = arith.addf %34, %35 : vector<16x1xf32>
      %37 = math.rsqrt %36 : vector<16x1xf32>
      %38 = vector.broadcast %37 : vector<16x1xf32> to vector<16x32xf32>
      %39 = arith.mulf %29, %38 : vector<16x32xf32>
      %c0_23 = arith.constant 0 : index
      %c0_24 = arith.constant 0 : index
      %40 = vector.load %arg5[%c0_23, %c0_24] : memref<1x32xf32, #tpu.memory_space<vmem>>, vector<1x32xf32>
      %41 = vector.broadcast %40 : vector<1x32xf32> to vector<16x32xf32>
      %42 = arith.mulf %39, %41 : vector<16x32xf32>
      %c0_25 = arith.constant 0 : index
      %c0_26 = arith.constant 0 : index
      %43 = vector.load %arg6[%c0_25, %c0_26] : memref<1x32xf32, #tpu.memory_space<vmem>>, vector<1x32xf32>
      %44 = vector.broadcast %43 : vector<1x32xf32> to vector<16x32xf32>
      %45 = arith.addf %42, %44 : vector<16x32xf32>
      %46 = arith.truncf %45 : vector<16x32xf32> to vector<16x32xbf16>
      %c0_27 = arith.constant 0 : index
      %c0_28 = arith.constant 0 : index
      %47 = vector.load %arg10[%c0_27, %c0_28] : memref<16x32xbf16, #tpu.memory_space<vmem>>, vector<16x32xbf16>
      tpu.vector_store %arg10[%c0_27, %c0_28], %46 {strides = array<i32>} : memref<16x32xbf16, #tpu.memory_space<vmem>>, vector<16x32xbf16>,
    } else {
    }
    %c0 = arith.constant 0 : index
    %c0_1 = arith.constant 0 : index
    %3 = vector.load %arg10[%c0, %c0_1] : memref<16x32xbf16, #tpu.memory_space<vmem>>, vector<16x32xbf16>
    %c0_2 = arith.constant 0 : index
    %c0_3 = arith.constant 0 : index
    %4 = vector.load %arg7[%c0_2, %c0_3] : memref<32x128xbf16, #tpu.memory_space<vmem>>, vector<32x128xbf16>
    %cst = arith.constant dense<0.000000e+00> : vector<16x128xf32>
    %5 = tpu.matmul %3, %4, %cst {dimension_numbers = #tpu.dot_dimension_numbers<[1], [0], [0], [1], [0, 0, 1, 1], [], []>} : vector<16x32xbf16>, vector<32x128xbf16>, vector<16x128xf32> -> vector<16x128xf32>
    %c0_4 = arith.constant 0 : index
    %c0_5 = arith.constant 0 : index
    %6 = vector.load %arg8[%c0_4, %c0_5] : memref<1x128xf32, #tpu.memory_space<vmem>>, vector<1x128xf32>
    %7 = vector.broadcast %6 : vector<1x128xf32> to vector<16x128xf32>
    %8 = arith.addf %5, %7 : vector<16x128xf32>
    %c0_6 = arith.constant 0 : index
    %c0_7 = arith.constant 0 : index
    %9 = vector.load %arg9[%c0_6, %c0_7] : memref<16x128xf32, #tpu.memory_space<vmem>>, vector<16x128xf32>
    tpu.vector_store %arg9[%c0_6, %c0_7], %8 {strides = array<i32>} : memref<16x128xf32, #tpu.memory_space<vmem>>, vector<16x128xf32>,
    return
  }
  func.func @transform_0(%arg0: i32, %arg1: i32) -> (i32, i32) {
    %c0_i32 = arith.constant 0 : i32
    %c0_i32_0 = arith.constant 0 : i32
    return %arg0, %c0_i32 : i32, i32
  }
  func.func @transform_1(%arg0: i32, %arg1: i32) -> (i32, i32) {
    %c0_i32 = arith.constant 0 : i32
    %c0_i32_0 = arith.constant 0 : i32
    %c0_i32_1 = arith.constant 0 : i32
    return %c0_i32, %c0_i32_0 : i32, i32
  }
  func.func @transform_2(%arg0: i32, %arg1: i32) -> (i32, i32) {
    %c0_i32 = arith.constant 0 : i32
    %c0_i32_0 = arith.constant 0 : i32
    %c0_i32_1 = arith.constant 0 : i32
    return %c0_i32, %c0_i32_0 : i32, i32
  }
  func.func @transform_3(%arg0: i32, %arg1: i32) -> (i32, i32) {
    %c0_i32 = arith.constant 0 : i32
    %c0_i32_0 = arith.constant 0 : i32
    %c0_i32_1 = arith.constant 0 : i32
    return %c0_i32, %c0_i32_0 : i32, i32
  }
  func.func @transform_4(%arg0: i32, %arg1: i32) -> (i32, i32) {
    %c0_i32 = arith.constant 0 : i32
    %c0_i32_0 = arith.constant 0 : i32
    %c0_i32_1 = arith.constant 0 : i32
    return %c0_i32, %c0_i32_0 : i32, i32
  }
  func.func @transform_5(%arg0: i32, %arg1: i32) -> (i32, i32) {
    %c0_i32 = arith.constant 0 : i32
    %c0_i32_0 = arith.constant 0 : i32
    return %c0_i32, %arg1 : i32, i32
  }
  func.func @transform_6(%arg0: i32, %arg1: i32) -> (i32, i32) {
    %c0_i32 = arith.constant 0 : i32
    %c0_i32_0 = arith.constant 0 : i32
    return %c0_i32, %arg1 : i32, i32
  }
  func.func @transform_7(%arg0: i32, %arg1: i32) -> (i32, i32) {
    %c0_i32 = arith.constant 0 : i32
    return %arg0, %arg1 : i32, i32
  }
}

</mosaic_0001>

<bundles_post_ra>
// kernel: tpu_custom_call.1
= control target key start
LH: loop header
LB: loop body
LE: loop exit
PB: predicated region body
PF: predicated region fallthrough
CT: control target
= control target key end

     0   :  { %12 = vsyncpa [#allocation4], 0  ;;  %s569_s0 = inlined_call_operand.hbm [shape: bf16[16,32], index: 0, kind: input, shape index: {}]   ;;  %s570_s1 = inlined_call_operand.hbm [shape: bf16[32,32], index: 1, kind: input, shape index: {}]   ;;  %s571_s2 = inlined_call_operand.vmem [shape: f32[1,32], index: 2, kind: input, shape index: {}]   ;;  %s572_s3 = inlined_call_operand.vmem [shape: f32[1,32], index: 3, kind: input, shape index: {}]   ;;  %s573_s4 = inlined_call_operand.hbm [shape: f32[1,32], index: 4, kind: input, shape index: {}]   ;;  %s574_s5 = inlined_call_operand.vmem [shape: bf16[32,128], index: 5, kind: input, shape index: {}]   ;;  %s575_s6 = inlined_call_operand.vmem [shape: f32[1,128], index: 6, kind: input, shape index: {}]   ;;  %s576_s7 = inlined_call_operand.hbm [shape: f32[16,128], index: 7, kind: output, shape index: {}]  }
   0x1   :  { %13 = vsyncpa [#allocation7], 0 }
   0x2   :  { %14 = vsyncpa [#allocation5], 0  ;;  %s442_s24 = smov [#allocation6]   ;;  %s443_s26 = smov [#allocation3]  }
   0x3   :  { %s32_s25 = sshll.u32 %s442_s24, 4  ;;  %s20_s27 = sshll.u32 %s443_s26, 4  ;;  %s33_s25 = int_to_ptr.vmem [resolvable:$true] %s32_s25  ;;  %s492_s27 = int_to_ptr.vmem [resolvable:$true] %s20_s27 }
   0x4   :  { %s348_s30 = scalar_lea.hbm %s570_s1, 256 }
   0x5   :  { %p349_p0 = scmp.ne.s32.totalorder %s570_s1, %s348_s30  ;;  %p352_p1 = scmp.lt.u32.totalorder %s348_s30, %s570_s1 }
   0x7   :  { %p354_p2 = pnand %p352_p1, %p349_p0 }
   0x9   :  { %357 = shalt.err (!%p354_p2)
}
   0xa   :  { %s358_s12 = scalar_lea.vmem %s33_s25, 256  ;;  %p363_p4 = scmp.lt.s32.totalorder %s33_s25, %s33_s25 }
   0xb   :  { %p359_p3 = scmp.ne.s32.totalorder %s33_s25, %s358_s12  ;;  %p364_p5 = scmp.lt.s32.totalorder %s358_s12, %s358_s12 }
   0xd   :  { %p365_p6 = por %p364_p5, %p363_p4 }
   0xf   :  { %p366_p7 = pnand %p365_p6, %p359_p3 }
  0x11   :  { %369 = shalt.err (!%p366_p7)
}
  0x12   :  { %s444_s13 = smov 64   ;;  %s445_s14 = smov 4  }
  0x13   :  { %38 = dma.hbm_to_vmem [thread:$0]  %s570_s1, 256, %s33_s25, [#allocation7], %s444_s13, %s444_s13, %s445_s14  }
  0x14   :  { %s370_s19 = scalar_lea.hbm %s569_s0, 128 }
  0x15   :  { %p371_p8 = scmp.ne.s32.totalorder %s569_s0, %s370_s19  ;;  %p374_p9 = scmp.lt.u32.totalorder %s370_s19, %s569_s0 }
  0x17   :  { %p376_p10 = pnand %p374_p9, %p371_p8 }
  0x19   :  { %379 = shalt.err (!%p376_p10)
}
  0x1a   :  { %s380_s24 = scalar_lea.vmem %s492_s27, 128  ;;  %p385_p12 = scmp.lt.s32.totalorder %s492_s27, %s492_s27 }
  0x1b   :  { %p381_p11 = scmp.ne.s32.totalorder %s492_s27, %s380_s24  ;;  %p386_p13 = scmp.lt.s32.totalorder %s380_s24, %s380_s24 }
  0x1d   :  { %p387_p0 = por %p386_p13, %p385_p12 }
  0x1f   :  { %p388_p1 = pnand %p387_p0, %p381_p11 }
  0x21   :  { %391 = shalt.err (!%p388_p1)
}
  0x22   :  { %26 = dma.hbm_to_vmem [thread:$0]  %s569_s0, 128, %s492_s27, [#allocation4], %s444_s13, %s444_s13, %s445_s14  }
  0x23   :  { %s446_s26 = smov [#allocation8]   ;;  %s392_s8 = scalar_lea.hbm %s573_s4, 16 }
  0x24   :  { %s49_s28 = sshll.u32 %s446_s26, 4  ;;  %p393_p2 = scmp.ne.s32.totalorder %s573_s4, %s392_s8  ;;  %s50_s28 = int_to_ptr.vmem [resolvable:$true] %s49_s28 }
  0x25   :  { %p396_p3 = scmp.lt.u32.totalorder %s392_s8, %s573_s4 }
  0x27   :  { %p398_p4 = pnand %p396_p3, %p393_p2 }
  0x29   :  { %401 = shalt.err (!%p398_p4)
}
  0x2a   :  { %s402_s15 = scalar_lea.vmem %s50_s28, 16  ;;  %s406_s0 = scalar_lea.vmem %s50_s28, 32 }
  0x2b   :  { %p403_p5 = scmp.ne.s32.totalorder %s50_s28, %s402_s15  ;;  %p407_p6 = scmp.lt.s32.totalorder %s50_s28, %s50_s28 }
  0x2c   :  { %p408_p7 = scmp.lt.s32.totalorder %s406_s0, %s402_s15 }
  0x2e   :  { %p409_p8 = por %p408_p7, %p407_p6 }
  0x30   :  { %p410_p9 = pnand %p409_p8, %p403_p5 }
  0x32   :  { %413 = shalt.err (!%p410_p9)
}
  0x33   :  { %52 = dma.hbm_to_vmem [thread:$0]  %s573_s4, 16, %s50_s28, [#allocation7]  }
  0x34   :  { %436 = dma.done.wait [#allocation4], 128  }
  0x35   :  { %437 = vsyncadd [#allocation4], 4294967168 }
  0x36   :  { %438 = dma.done.wait [#allocation7], 272  }
  0x37   :  { %439 = vsyncadd [#allocation7], 4294967024  ;;  %v447_v0 = vmov 0.0   ;;  %vm448_vm0 = vmmov 0   ;;  %v335_v1 = vld [vmem:[#allocation6] sm:$0xff]   ;;  %v336_v2 = vld [vmem:[#allocation6 + $0x8] sm:$0xff]  }
  0x38   :  { %309 = vmatprep.subr.bf16.mxu0 %v447_v0  ;;  %313 = vmatprep.mubr.msk.bf16.mxu0 %vm448_vm0, %v447_v0  ;;  %v337_v3 = vld [vmem:[#allocation3] sm:$0xff]   ;;  %vm101_vm1 = vcmask 261120   ;;  %v292_v4 = vld [vmem:[%s571_s2] ss:$0 sm:$0xff]  ;;  %v339_v34 = vld [vmem:[%s574_s5 + $0x8] sm:$0xff]   ;;  %s449_s22 = smov [#allocation9]  }
  0x39   :  { %317 = vmatprep.subr.bf16.mxu1 %v447_v0  ;;  %321 = vmatprep.mubr.msk.bf16.mxu1 %vm448_vm0, %v447_v0  ;;  %v338_v33 = vld [vmem:[%s574_s5] sm:$0xff]   ;;  %v298_v47 = vld [vmem:[#allocation8] ss:$0 sm:$0xff]  ;;  %s279_s23 = sshll.u32 %s449_s22, 4  ;;  %s280_s23 = int_to_ptr.vmem [resolvable:$true] %s279_s23 }
  0x3a   :  { %310 = vmatpush3.bf16.msra.mxu0 %v335_v1  ;;  %318 = vmatpush3.bf16.msra.mxu1 %v338_v33  ;;  %v297_v43 = vld [vmem:[%s572_s3] ss:$0 sm:$0xff]  ;;  %s414_s3 = scalar_lea.vmem %s280_s23, 256  ;;  %p419_p11 = scmp.lt.s32.totalorder %s280_s23, %s280_s23 }
  0x3b   :  { %311 = vmatprep.subr.bf16.mxu0 %v447_v0  ;;  %319 = vmatprep.subr.bf16.mxu1 %v447_v0  ;;  %v299_v53 = vld [vmem:[%s575_s6] ss:$0 sm:$0xff]  ;;  %p415_p10 = scmp.ne.s32.totalorder %s280_s23, %s414_s3  ;;  %p420_p12 = scmp.lt.s32.totalorder %s414_s3, %s414_s3 }
  0x3d   :  { %p421_p13 = por %p420_p12, %p419_p11 }
  0x3e   :  { %312 = vmatpush3.bf16.msra.mxu0 %v336_v2  ;;  %320 = vmatpush3.bf16.msra.mxu1 %v339_v34 }
  0x3f   :  { %p422_p0 = pnand %p421_p13, %p415_p10 }
  0x41   :  { %314 = vmatmul.mubr.msk.bf16.vlgmr.msra.gmra.mrb[0].mxu0 %vm101_vm1, %v337_v3 }
 0x114   :  { %v139_v5 = vpop.f32.mrb[0].mxu0 }
 0x115   :  { %v140_v6 = vadd.f32 %v292_v4, %v139_v5  ;;  %v315_v7 = vpop.f32.mrb[1].mxu0 }
 0x116   :  { %v142_v8 = vpop.f32.mrb[2].mxu0 }
 0x117   :  { %v148_v9 = vmul.f32 0.70710677, %v140_v6  ;;  %v143_v10 = vadd.f32 %v292_v4, %v142_v8  ;;  %v316_v11 = vpop.f32.mrb[3].mxu0  ;;  %v146_v14 = vmul.f32 0.5, %v140_v6 }
 0x119   :  { %340 = verf.f32 %v148_v9  ;;  %v149_v12 = vmul.f32 0.70710677, %v143_v10  ;;  %v147_v17 = vmul.f32 0.5, %v143_v10 }
 0x11b   :  { %342 = verf.f32 %v149_v12 }
 0x123   :  { %v341_v13 = vpop.eup %340 }
 0x124   :  { %v152_v15 = vadd.f32 1.0, %v341_v13 }
 0x125   :  { %v343_v16 = vpop.eup %342 }
 0x126   :  { %v154_v18 = vmul.f32 %v152_v15, %v146_v14  ;;  %v153_v19 = vadd.f32 1.0, %v343_v16 }
 0x128   :  { %v156_v20 = vsel %vm101_vm1, %v154_v18, 0.0  ;;  %v155_v21 = vmul.f32 %v153_v19, %v147_v17 }
 0x129   :  { %157 = vadd.xlane.f32.xlu0 %v156_v20 }
 0x12a   :  { %v159_v22 = vsel %vm101_vm1, %v155_v21, 0.0 }
 0x12d   :  { %160 = vadd.xlane.f32.xlu0 %v159_v22 }
 0x1b6   :  { %v158_v23 = vpop.xlane.xlu0 %157 }
 0x1b7   :  { %v163_v24 = vmul.f32 0.03125, %v158_v23 }
 0x1b9   :  { %v165_v25 = vsub.f32 %v154_v18, %v163_v24 }
 0x1ba   :  { %v161_v26 = vpop.xlane.xlu0 %160 }
 0x1bb   :  { %v164_v27 = vmul.f32 0.03125, %v161_v26  ;;  %v167_v28 = vmul.f32 %v165_v25, %v165_v25 }
 0x1bd   :  { %v166_v29 = vsub.f32 %v155_v21, %v164_v27  ;;  %v169_v30 = vsel %vm101_vm1, %v167_v28, 0.0 }
 0x1be   :  { %170 = vadd.xlane.f32.xlu1 %v169_v30 }
 0x1bf   :  { %v168_v31 = vmul.f32 %v166_v29, %v166_v29 }
 0x1c1   :  { %v172_v32 = vsel %vm101_vm1, %v168_v31, 0.0 }
 0x1c2   :  { %173 = vadd.xlane.f32.xlu1 %v172_v32 }
 0x24b   :  { %v171_v35 = vpop.xlane.xlu1 %170 }
 0x24c   :  { %v175_v36 = vmul.f32 0.03125, %v171_v35 }
 0x24e   :  { %v177_v37 = vadd.f32 1e-12, %v175_v36 }
 0x24f   :  { %v174_v38 = vpop.xlane.xlu1 %173 }
 0x250   :  { %344 = vrsqrt.f32 %v177_v37  ;;  %v176_v39 = vmul.f32 0.03125, %v174_v38 }
 0x252   :  { %v178_v40 = vadd.f32 1e-12, %v176_v39 }
 0x254   :  { %346 = vrsqrt.f32 %v178_v40 }
 0x25a   :  { %v345_v41 = vpop.eup %344 }
 0x25b   :  { %v181_v42 = vmul.f32 %v345_v41, %v165_v25 }
 0x25d   :  { %v190_v45 = vmul.f32 %v297_v43, %v181_v42 }
 0x25e   :  { %v347_v44 = vpop.eup %346 }
 0x25f   :  { %v182_v46 = vmul.f32 %v347_v44, %v166_v29  ;;  %v199_v49 = vadd.f32 %v298_v47, %v190_v45 }
 0x261   :  { %v191_v48 = vmul.f32 %v297_v43, %v182_v46 }
 0x263   :  { %v200_v50 = vadd.f32 %v298_v47, %v191_v48 }
 0x265   :  { %v201_v51 = vpack.c.bf16 %v200_v50, %v199_v49 }
 0x267   :  { %202 = vst.msk [vmem:[#allocation2] sm:$0xff] %vm101_vm1, %v201_v51 }
 0x26e   :  { %v203_v52 = vld [vmem:[#allocation2] sm:$0xff] }
 0x26f   :  { %322 = vmatmul.mubr.msk.bf16.vlgmr.msra.gmra.mrb[0].mxu1 %vm101_vm1, %v203_v52 }
 0x342   :  { %v265_v54 = vpop.f32.mrb[0].mxu1 }
 0x343   :  { %v266_v55 = vadd.f32 %v299_v53, %v265_v54  ;;  %v323_v56 = vpop.f32.mrb[1].mxu1 }
 0x344   :  { %v268_v57 = vpop.f32.mrb[2].mxu1 }
 0x345   :  { %272 = vst [vmem:[#allocation9] sm:$0xff] %v266_v55  ;;  %v269_v58 = vadd.f32 %v299_v53, %v268_v57  ;;  %v324_v59 = vpop.f32.mrb[3].mxu1 }
 0x347   :  { %273 = vst [vmem:[#allocation9 + $0x8] sm:$0xff] %v269_v58 }
 0x348   :  { %425 = shalt.err (!%p422_p0)
}
 0x349   :  { %s426_s1 = scalar_lea.hbm %s576_s7, 256 }
 0x34a   :  { %p427_p1 = scmp.ne.s32.totalorder %s576_s7, %s426_s1  ;;  %p430_p2 = scmp.lt.u32.totalorder %s426_s1, %s576_s7 }
 0x34c   :  { %p432_p3 = pnand %p430_p2, %p427_p1 }
 0x34e   :  { %435 = shalt.err (!%p432_p3)
}
 0x34f   :  { %s450_s30 = smov 128   ;;  %s451_s8 = smov 8  }
 0x350   :  { %285 = dma.vmem_to_hbm [thread:$0]  %s280_s23, 256, %s576_s7, [#allocation5], %s450_s30, %s450_s30, %s451_s8  }
 0x351   :  { %440 = dma.done.wait [#allocation5], 256  }
 0x352   :  { %441 = vsyncadd [#allocation5], 4294967040 }
 0x353   :  { %289 = vsyncpa [#allocation4], 1 }
 0x354   :  { %290 = vsyncpa [#allocation7], 1 }
 0x355   :  { %291 = vsyncpa [#allocation5], 1 }

</bundles_post_ra>
